<compile_context>
chip_gen: v5e
topology: v5e:2x2
jax: 0.10.0
libtpu: 0.0.40
codegen_flags: <defaults>
</compile_context>

<pallas_src>
import math

import jax
import jax.numpy as jnp
from jax.experimental import pallas as pl
from jax.experimental.pallas import tpu as pltpu


def _stream_embed_kernel(x_ref, emb_ref, o_ref):
    # x_ref  : (C, P, DIM) chunk of flattened (batch*stream*seq) rows
    # emb_ref: (1, P, DIM) per-row stream embedding for one period (resident across steps)
    # o_ref  : (C, P, DIM)
    o_ref[...] = x_ref[...] + emb_ref[...]  # broadcast over the leading block axis


def stream_embed_forward(residuals, stream_embed, *, num_streams,
                         channel_first=False, expand_to_streams=False,
                         target_block_bytes=4 * 1024 * 1024):
    """residuals: (B*S, ..., DIM), stream_embed: (S, DIM) -> same shape/dtype as residuals.

    Matches StreamEmbed.forward with channel_first=False, expand_to_streams=False:
        out[i, ..., :] = residuals[i, ..., :] + stream_embed[i % S, :]
    """
    if channel_first or expand_to_streams:
        # TODO(synk): channel_first / expand_to_streams variants are not implemented.
        raise NotImplementedError(
            "StreamEmbed Pallas kernel only supports channel_first=False, expand_to_streams=False")

    orig_shape = residuals.shape
    bs, dim = orig_shape[0], orig_shape[-1]
    s = int(num_streams)
    assert bs % s == 0, "leading axis must be divisible by num_streams"
    seq = int(math.prod(orig_shape[1:-1]))  # collapse any middle dims; 1 if none
    n = bs * seq                             # total rows of (dim,)
    itemsize = jnp.dtype(residuals.dtype).itemsize
    pack = max(8, 32 // itemsize)            # sublane pack: f32 -> 8, bf16 -> 16, int8 -> 32

    # Period of the stream pattern along flattened rows: row r gets stream (r // seq) % s,
    # repeating every base = s*seq rows.  Pick P = k*base that divides n and is a multiple
    # of the sublane pack so the (rows, P, dim) layout has NO sublane padding.
    base = s * seq
    b = bs // s
    P = base  # fallback (may pad planes if base % pack != 0; still correct)
    for k in range(1, min(b, 4 * pack) + 1):  # tiny bounded search (<=128 iterations)
        if b % k == 0 and (base * k) % pack == 0:
            P = base * k
            break
    rows = n // P
    plane_bytes = P * dim * itemsize

    # Block sizing: ~target bytes, hard-capped at 10 MiB (v7x 64 MiB VMEM headroom once
    # input and output are both double-buffered), ragged last block allowed, and >= 2 grid
    # steps whenever possible so v7x's 2 TensorCores both get work.
    eff_target = min(int(target_block_bytes), 10 * 1024 * 1024)
    c = max(1, eff_target // plane_bytes)
    c = min(c, rows)
    if rows >= 2:
        c = min(c, (rows + 1) // 2)
    grid = ((rows + c - 1) // c,)

    blk_bytes = c * plane_bytes
    emb_bytes = max(P, 8) * dim * itemsize
    # 2x input + 2x output (double-buffered) + 2x resident emb + headroom for compiler scratch.
    vmem_limit = min(4 * blk_bytes + 2 * emb_bytes + 8 * 1024 * 1024, 100 * 1024 * 1024)

    x = residuals.reshape(rows, P, dim)
    # Embedding plane for one period: row p -> stream_embed[(p // seq) % s].
    emb = jnp.tile(
        jnp.repeat(stream_embed.astype(residuals.dtype), seq, axis=0),
        (P // base, 1),
    ).reshape(1, P, dim)

    out = pl.pallas_call(
        _stream_embed_kernel,
        out_shape=jax.ShapeDtypeStruct((rows, P, dim), residuals.dtype),
        grid_spec=pltpu.PrefetchScalarGridSpec(
            num_scalar_prefetch=0,
            grid=grid,
            in_specs=[
                # large contiguous, lane-dense residual block
                pl.BlockSpec((c, P, dim), lambda i: (i, 0, 0)),
                # tiny embedding slab: constant block index -> DMA'd once, stays in VMEM
                pl.BlockSpec((1, P, dim), lambda i: (0, 0, 0)),
            ],
            out_specs=pl.BlockSpec((c, P, dim), lambda i: (i, 0, 0)),
        ),
        # Reuse the residuals buffer for the output when the caller donates it.
        input_output_aliases={0: 0},
        compiler_params=pltpu.CompilerParams(
            dimension_semantics=("parallel",),
            vmem_limit_bytes=int(vmem_limit),
        ),
    )(x, emb)

    return out.reshape(orig_shape)


def _reference(residuals, stream_embed, num_streams):
    bs = residuals.shape[0]
    b = bs // num_streams
    r = residuals.reshape((b, num_streams) + residuals.shape[1:])
    emb = stream_embed.astype(residuals.dtype)
    emb = emb.reshape((1, num_streams) + (1,) * (residuals.ndim - 2) + (residuals.shape[-1],))
    return (r + emb).reshape(residuals.shape)


if __name__ == "__main__":
    key = jax.random.PRNGKey(0)
    k1, k2, k3, ke = jax.random.split(key, 4)

    fwd = jax.jit(
        stream_embed_forward,
        static_argnames=("num_streams", "channel_first", "expand_to_streams",
                         "target_block_bytes"),
    )

    S, DIM = 4, 128
    # Module __init__ uses zeros; use non-zero values so the add is exercised.
    stream_embed = 0.1 * jax.random.normal(ke, (S, DIM), dtype=jnp.float32)

    # Case 1: middle dims (2, 4), f32.  P=32 (multiple of f32 pack 8), multi-step grid,
    # resident embedding slab.  References computed before the kernel call (aliasing-safe).
    B = 2
    residuals = jax.random.normal(k1, (B * S, 2, 4, DIM), dtype=jnp.float32)
    ref1 = _reference(residuals, stream_embed, S)
    out1 = jax.block_until_ready(fwd(residuals, stream_embed, num_streams=S))
    assert out1.shape == residuals.shape and out1.dtype == residuals.dtype
    assert jnp.allclose(out1, ref1, atol=1e-6), "mismatch vs reference (case 1)"

    # Case 2: bf16 residuals, small target block -> multiple grid steps; P=32 is a multiple
    # of the bf16 sublane pack (16), so no padding blowup.
    B2 = 4
    residuals2 = jax.random.normal(k2, (B2 * S, 8, DIM), dtype=jnp.bfloat16)
    ref2 = _reference(residuals2, stream_embed, S)
    out2 = jax.block_until_ready(fwd(residuals2, stream_embed, num_streams=S,
                                     target_block_bytes=32 * 1024))
    assert out2.shape == residuals2.shape and out2.dtype == residuals2.dtype
    assert jnp.allclose(out2.astype(jnp.float32), ref2.astype(jnp.float32),
                        atol=1e-2), "mismatch vs reference (case 2)"

    # Case 3: ragged grid (rows=5, block=3 -> grid of 2 with a partial last block), f32.
    B3 = 5
    residuals3 = jax.random.normal(k3, (B3 * S, 8, DIM), dtype=jnp.float32)
    ref3 = _reference(residuals3, stream_embed, S)
    out3 = jax.block_until_ready(fwd(residuals3, stream_embed, num_streams=S,
                                     target_block_bytes=48 * 1024))
    assert out3.shape == residuals3.shape and out3.dtype == residuals3.dtype
    assert jnp.allclose(out3, ref3, atol=1e-6), "mismatch vs reference (case 3)"

    print("KERNEL_OK")
</pallas_src>

<mosaic_0001>
module attributes {stable_mosaic.version = 11 : i64} {
  func.func @_stream_embed_kernel(%arg0: i32, %arg1: memref<1x32x128xf32, #tpu.memory_space<vmem>>, %arg2: memref<1x32x128xf32, #tpu.memory_space<vmem>>, %arg3: memref<1x32x128xf32, #tpu.memory_space<vmem>>) attributes {dimension_semantics = [#tpu.dimension_semantics<parallel>], iteration_bounds = array<i64: 2>, scalar_prefetch = 0 : i64, scratch_operands = 0 : i64, tpu.core_type = #tpu.core_type<tc>, window_params = [{transform_indices = @transform_0, window_bounds = array<i64: 1, 32, 128>}, {pipeline_mode = #tpu.pipeline_mode<synchronous>, transform_indices = @transform_1, window_bounds = array<i64: 1, 32, 128>}, {transform_indices = @transform_2, window_bounds = array<i64: 1, 32, 128>}]} {
    %c0 = arith.constant 0 : index
    %c0_0 = arith.constant 0 : index
    %c0_1 = arith.constant 0 : index
    %0 = vector.load %arg1[%c0, %c0_0, %c0_1] : memref<1x32x128xf32, #tpu.memory_space<vmem>>, vector<1x32x128xf32>
    %c0_2 = arith.constant 0 : index
    %c0_3 = arith.constant 0 : index
    %c0_4 = arith.constant 0 : index
    %1 = vector.load %arg2[%c0_2, %c0_3, %c0_4] : memref<1x32x128xf32, #tpu.memory_space<vmem>>, vector<1x32x128xf32>
    %2 = arith.addf %0, %1 : vector<1x32x128xf32>
    %c0_5 = arith.constant 0 : index
    %c0_6 = arith.constant 0 : index
    %c0_7 = arith.constant 0 : index
    %3 = vector.load %arg3[%c0_5, %c0_6, %c0_7] : memref<1x32x128xf32, #tpu.memory_space<vmem>>, vector<1x32x128xf32>
    tpu.vector_store %arg3[%c0_5, %c0_6, %c0_7], %2 {strides = array<i32>} : memref<1x32x128xf32, #tpu.memory_space<vmem>>, vector<1x32x128xf32>,
    return
  }
  func.func @transform_0(%arg0: i32) -> (i32, i32, i32) {
    %c0_i32 = arith.constant 0 : i32
    %c0_i32_0 = arith.constant 0 : i32
    %c0_i32_1 = arith.constant 0 : i32
    return %arg0, %c0_i32, %c0_i32_0 : i32, i32, i32
  }
  func.func @transform_1(%arg0: i32) -> (i32, i32, i32) {
    %c0_i32 = arith.constant 0 : i32
    %c0_i32_0 = arith.constant 0 : i32
    %c0_i32_1 = arith.constant 0 : i32
    %c0_i32_2 = arith.constant 0 : i32
    return %c0_i32, %c0_i32_0, %c0_i32_1 : i32, i32, i32
  }
  func.func @transform_2(%arg0: i32) -> (i32, i32, i32) {
    %c0_i32 = arith.constant 0 : i32
    %c0_i32_0 = arith.constant 0 : i32
    %c0_i32_1 = arith.constant 0 : i32
    return %arg0, %c0_i32, %c0_i32_0 : i32, i32, i32
  }
}

</mosaic_0001>

<bundles_post_ra>
// kernel: stream_embed_forward.1
= control target key start
LH: loop header
LB: loop body
LE: loop exit
PB: predicated region body
PF: predicated region fallthrough
CT: control target
= control target key end

     0   :  { %s259_s9 = smov 0   ;;  %s288_s0 = inlined_call_operand.vmem [shape: f32[2,32,128], index: 0, kind: input, shape index: {}, may-alias: {0,2}]   ;;  %s289_s1 = inlined_call_operand.vmem [shape: f32[1,32,128], index: 1, kind: input, shape index: {}]   ;;  %s290_s2 = inlined_call_operand.vmem [shape: f32[2,32,128], index: 2, kind: output, shape index: {}, may-alias: {0,2}]  }
   0x1 LB: > { %s215_s10 = sadd.s32 4294967295, %s242_s9   ;;  %p219_p0 = scmp.ge.s32.totalorder %s242_s9, 1  ;;  %s242_s9 = sphi %s259_s9, %s12_s9  }
   0x2   : > { %p112_p1 = scmp.lt.s32.totalorder %s242_s9, 3 }
   0x4   : > { %p113_p2 = pnand %p219_p0, %p112_p1 }
   0x5   : > { %p134_p3 = scmp.lt.s32.totalorder (!%p113_p2), %s215_s10, 1 }
   0x6   : > { %116 = sbr.rel (%p113_p2) target bundleno = 21 (0x15), region = 28 }
   0xb   : > { %s292_s10 = smov (!%p134_p3, %s215_s10), 1  ;;  %v148_v0 = vld [vmem:[%s289_s1] sm:$0xff]  ;;  %v149_v1 = vld [vmem:[%s289_s1 + $0x8] sm:$0xff]  ;;  %v150_v2 = vld [vmem:[%s289_s1 + $0x10] sm:$0xff] }
   0xc   : > { %s226_s11 = sshll.u32 %s292_s10, 5  ;;  %v151_v3 = vld [vmem:[%s289_s1 + $0x18] sm:$0xff] }
   0xd   : > { %s138_s20 = scalar_lea.vmem %s288_s0, %s226_s11  ;;  %s143_s25 = scalar_lea.vmem %s290_s2, %s226_s11 }
   0xe   : > { %v144_v4 = vld [vmem:[%s138_s20] sm:$0xff]  ;;  %v145_v5 = vld [vmem:[%s138_s20 + $0x8] sm:$0xff]  ;;  %v146_v6 = vld [vmem:[%s138_s20 + $0x10] sm:$0xff] }
   0xf   : > { %v147_v7 = vld [vmem:[%s138_s20 + $0x18] sm:$0xff]  ;;  %v152_v8 = vadd.f32 %v148_v0, %v144_v4  ;;  %v153_v9 = vadd.f32 %v149_v1, %v145_v5  ;;  %v154_v10 = vadd.f32 %v150_v2, %v146_v6 }
  0x10   : > { %v155_v11 = vadd.f32 %v151_v3, %v147_v7 }
  0x11   : > { %156 = vst [vmem:[%s143_s25] sm:$0xff] %v152_v8 }
  0x12   : > { %157 = vst [vmem:[%s143_s25 + $0x8] sm:$0xff] %v153_v9 }
  0x13   : > { %158 = vst [vmem:[%s143_s25 + $0x10] sm:$0xff] %v154_v10 }
  0x14   : > { %159 = vst [vmem:[%s143_s25 + $0x18] sm:$0xff] %v155_v11 }
  0x15 PF: > { %s12_s9 = sadd.s32 1, %s242_s9  }
  0x16   : > { %p9_p4 = scmp.ge.s32.totalorder %s12_s9, 4  }
  0x18   :  { %11 = sbr.rel (!%p9_p4) target bundleno = 1 (0x1), region = 58 }

</bundles_post_ra>
